<compile_context>
chip_gen: v7x
topology: tpu7x:2x2x1
jax: 0.10.0
libtpu: 0.0.40
codegen_flags: <defaults>
</compile_context>

<pallas_src>
import jax
import jax.numpy as jnp
from jax.experimental import pallas as pl
from jax.experimental.pallas import tpu as pltpu

_EPS = 1e-5        # LayerNorm eps (PyTorch default)
_NORM_EPS = 1e-12  # F.normalize eps (PyTorch default)
_LANE = 128
_TILE_CAP = 512    # rows per grid step; overhead-amortizing, VMEM use stays ~2-3 MB


def _round_up(x, m):
    return (x + m - 1) // m * m


def _choose_tile(batch):
    """Batch tile (multiple of 8) and padded batch; >=2 grid steps when possible."""
    b8 = _round_up(batch, 8)
    steps = max(1, -(-b8 // _TILE_CAP))
    if steps == 1 and b8 > 8:
        steps = 2  # v7x: a >=2-step "parallel" grid engages both TensorCores
    tile = _round_up(-(-b8 // steps), 8)
    return tile, tile * steps


def _layernorm_relu(h, gamma, beta):
    """Two-pass (numerically safe) LayerNorm followed by ReLU, all in f32."""
    n = h.shape[-1]
    mean = jnp.sum(h, axis=-1, keepdims=True) * (1.0 / n)
    c = h - mean
    var = jnp.sum(c * c, axis=-1, keepdims=True) * (1.0 / n)
    y = c * jax.lax.rsqrt(var + _EPS) * gamma + beta
    return jnp.maximum(y, 0.0)


def _successor_encoder_kernel(
    x_ref,                 # (TILE_B, k_pad) bf16 packed [obs|act|skill|1|0...]
    w1_ref,                # (k_pad, 256) bf16, bias folded into row `in_dim`
    w2_ref,                # (256, 128) bf16
    w3_ref,                # (128, out_pad=128) bf16, padded columns exactly zero
    vec_ref,               # (8, 256) f32 packed 1-D params
    o_ref,                 # (TILE_B, out_pad) bf16, lane-dense output slab
):
    wdt = w1_ref.dtype
    h1_dim = w1_ref.shape[1]
    h2_dim = w2_ref.shape[1]
    out_dim = o_ref.shape[1]

    # --- Layer 1: one merged matmul (input concat + bias folded into W1 rows),
    #     then LayerNorm -> ReLU.
    h1 = jnp.dot(x_ref[...].astype(wdt), w1_ref[...],
                 preferred_element_type=jnp.float32)
    h1 = _layernorm_relu(h1, vec_ref[0:1, :h1_dim], vec_ref[1:2, :h1_dim])

    # --- Layer 2: Linear -> LayerNorm -> ReLU.
    h2 = jnp.dot(h1.astype(wdt), w2_ref[...], preferred_element_type=jnp.float32)
    h2 = _layernorm_relu(h2 + vec_ref[2:3, :h2_dim],
                         vec_ref[3:4, :h2_dim], vec_ref[4:5, :h2_dim])

    # --- Output layer: Linear -> L2-normalize (torch.nn.functional.normalize).
    #     Padded lanes of W3 / b3 are exactly zero, so they do not perturb the norm.
    y = jnp.dot(h2.astype(wdt), w3_ref[...], preferred_element_type=jnp.float32)
    y = y + vec_ref[5:6, :out_dim]
    norm = jnp.sqrt(jnp.sum(y * y, axis=-1, keepdims=True))
    o_ref[...] = (y / jnp.maximum(norm, _NORM_EPS)).astype(o_ref.dtype)


def make_params(key, obs_dim, action_dim, skill_dim, dims=(256, 128),
                sparsity=0.2, weight_dtype=jnp.bfloat16):
    """Deterministic init of the NormedSparseMLP params, pre-packed for the kernel."""
    h1, h2 = dims
    in_dim = obs_dim + action_dim + skill_dim
    sizes = [in_dim, h1, h2, skill_dim]
    ws = []
    for i in range(3):
        fan_in, fan_out = sizes[i], sizes[i + 1]
        key, kw, km = jax.random.split(key, 3)
        w = jax.random.normal(kw, (fan_in, fan_out), jnp.float32) / jnp.sqrt(fan_in)
        # "Sparse": fixed binary mask zeroing `sparsity` fraction of entries.
        mask = (jax.random.uniform(km, (fan_in, fan_out)) >= sparsity).astype(jnp.float32)
        ws.append(w * mask)
    w1, w2, w3 = ws

    # Merged, lane-padded W1: rows [0, in_dim) are the real weights, row `in_dim`
    # holds the layer-1 bias (the packed input carries a constant 1.0 in that
    # lane), and the remaining padded rows are zero so padded input lanes are inert.
    k_pad = _round_up(in_dim + 1, _LANE)
    b1 = jnp.zeros((h1,), jnp.float32)
    w1p = jnp.zeros((k_pad, h1), jnp.float32).at[:in_dim].set(w1).at[in_dim].set(b1)

    # Lane-dense final layer: zero-pad skill_dim to a multiple of 128 so the kernel
    # writes unmasked full-lane stores; padded columns stay exactly zero.
    out_pad = _round_up(skill_dim, _LANE)
    w3p = jnp.zeros((h2, out_pad), jnp.float32).at[:, :skill_dim].set(w3)

    # Pack the remaining 1-D params into one (8, 256) f32 slab (single tiny DMA):
    #   row 0: gamma1  row 1: beta1
    #   row 2: b2      row 3: gamma2  row 4: beta2
    #   row 5: b3 (lane-padded with zeros)   rows 6-7: unused
    vec_w = _round_up(max(h1, h2, out_pad), _LANE)
    vec = jnp.zeros((8, vec_w), jnp.float32)
    vec = vec.at[0, :h1].set(1.0)   # gamma1 = 1
    vec = vec.at[3, :h2].set(1.0)   # gamma2 = 1
    # biases / betas are zero at init.

    return {
        "w1": w1p.astype(weight_dtype),
        "w2": w2.astype(weight_dtype),
        "w3": w3p.astype(weight_dtype),
        "vec": vec,
    }


@jax.jit
def successor_encoder_forward(obs, action_onehot, skill, params):
    batch = obs.shape[0]
    skill_dim = skill.shape[1]
    w1, w2, w3, vec = params["w1"], params["w2"], params["w3"], params["vec"]
    k_pad = w1.shape[0]
    out_pad = w3.shape[1]
    in_dim = obs.shape[1] + action_onehot.shape[1] + skill.shape[1]

    tile_b, b_pad = _choose_tile(batch)

    # Pack all inputs + a constant 1.0 (bias) lane into one lane-dense bf16 slab.
    # This is the only wrapper-side data movement (a single B x 128 bf16 copy).
    cols = [obs, action_onehot, skill, jnp.ones((batch, 1), obs.dtype)]
    if k_pad > in_dim + 1:
        cols.append(jnp.zeros((batch, k_pad - in_dim - 1), obs.dtype))
    x = jnp.concatenate(cols, axis=-1).astype(jnp.bfloat16)
    if b_pad != batch:
        x = jnp.pad(x, ((0, b_pad - batch), (0, 0)))

    tiled = lambda i: (i, 0)      # batch-tiled arrays
    resident = lambda i: (0, 0)   # weights stay VMEM-resident across the grid

    out = pl.pallas_call(
        _successor_encoder_kernel,
        out_shape=jax.ShapeDtypeStruct((b_pad, out_pad), jnp.bfloat16),
        grid_spec=pltpu.PrefetchScalarGridSpec(
            num_scalar_prefetch=0,
            grid=(b_pad // tile_b,),
            in_specs=[
                pl.BlockSpec((tile_b, k_pad), tiled),
                pl.BlockSpec(w1.shape, resident),
                pl.BlockSpec(w2.shape, resident),
                pl.BlockSpec(w3.shape, resident),
                pl.BlockSpec(vec.shape, resident),
            ],
            out_specs=pl.BlockSpec((tile_b, out_pad), tiled),
            # NOTE: if xprof ever shows exposed input DMA at TILE_B=512, bump the
            # batch-tiled specs to pipeline_mode=pl.Buffered(3); VMEM headroom is ample.
        ),
        compiler_params=pltpu.CompilerParams(
            dimension_semantics=("parallel",)),
    )(x, w1, w2, w3, vec)

    # Drop batch padding / lane padding; return f32 like the PyTorch module.
    return out[:batch, :skill_dim].astype(jnp.float32)


if __name__ == "__main__":
    obs_dim, action_dim, skill_dim = 17, 5, 10
    batch = 8

    root = jax.random.PRNGKey(0)
    k_params, k_obs, k_act, k_skill = jax.random.split(root, 4)

    params = make_params(k_params, obs_dim, action_dim, skill_dim)

    obs = jax.random.normal(k_obs, (batch, obs_dim), jnp.float32)
    action_idx = jax.random.randint(k_act, (batch,), 0, action_dim)
    action_onehot = jax.nn.one_hot(action_idx, action_dim, dtype=jnp.float32)
    skill = jax.random.normal(k_skill, (batch, skill_dim), jnp.float32)
    skill = skill / jnp.linalg.norm(skill, axis=-1, keepdims=True)

    out = successor_encoder_forward(obs, action_onehot, skill, params)
    jax.block_until_ready(out)

    assert out.shape == (batch, skill_dim), out.shape
    assert out.dtype == jnp.float32
    assert bool(jnp.all(jnp.isfinite(out)))
    print("KERNEL_OK")
</pallas_src>

<mosaic_0001>
module attributes {stable_mosaic.version = 11 : i64} {
  func.func @_successor_encoder_kernel(%arg0: i32, %arg1: memref<8x128xbf16, #tpu.memory_space<vmem>>, %arg2: memref<128x256xbf16, #tpu.memory_space<vmem>>, %arg3: memref<256x128xbf16, #tpu.memory_space<vmem>>, %arg4: memref<128x128xbf16, #tpu.memory_space<vmem>>, %arg5: memref<8x256xf32, #tpu.memory_space<vmem>>, %arg6: memref<8x128xbf16, #tpu.memory_space<vmem>>) attributes {dimension_semantics = [#tpu.dimension_semantics<parallel>], iteration_bounds = array<i64: 1>, scalar_prefetch = 0 : i64, scratch_operands = 0 : i64, tpu.core_type = #tpu.core_type<tc>, window_params = [{transform_indices = @transform_0, window_bounds = array<i64: 8, 128>}, {pipeline_mode = #tpu.pipeline_mode<synchronous>, transform_indices = @transform_1, window_bounds = array<i64: 128, 256>}, {pipeline_mode = #tpu.pipeline_mode<synchronous>, transform_indices = @transform_2, window_bounds = array<i64: 256, 128>}, {pipeline_mode = #tpu.pipeline_mode<synchronous>, transform_indices = @transform_3, window_bounds = array<i64: 128, 128>}, {pipeline_mode = #tpu.pipeline_mode<synchronous>, transform_indices = @transform_4, window_bounds = array<i64: 8, 256>}, {transform_indices = @transform_5, window_bounds = array<i64: 8, 128>}]} {
    %c0 = arith.constant 0 : index
    %c0_0 = arith.constant 0 : index
    %0 = vector.load %arg1[%c0, %c0_0] : memref<8x128xbf16, #tpu.memory_space<vmem>>, vector<8x128xbf16>
    %c0_1 = arith.constant 0 : index
    %c0_2 = arith.constant 0 : index
    %1 = vector.load %arg2[%c0_1, %c0_2] : memref<128x256xbf16, #tpu.memory_space<vmem>>, vector<128x256xbf16>
    %cst = arith.constant dense<0.000000e+00> : vector<8x256xf32>
    %2 = tpu.matmul %0, %1, %cst {dimension_numbers = #tpu.dot_dimension_numbers<[1], [0], [0], [1], [0, 0, 1, 1], [], []>} : vector<8x128xbf16>, vector<128x256xbf16>, vector<8x256xf32> -> vector<8x256xf32>
    %c0_3 = arith.constant 0 : index
    %c0_4 = arith.constant 0 : index
    %3 = vector.load %arg5[%c0_3, %c0_4] : memref<8x256xf32, #tpu.memory_space<vmem>>, vector<1x256xf32>
    %c1 = arith.constant 1 : index
    %c0_5 = arith.constant 0 : index
    %4 = vector.load %arg5[%c1, %c0_5] : memref<8x256xf32, #tpu.memory_space<vmem>>, vector<1x256xf32>
    %cst_6 = arith.constant dense<0.000000e+00> : vector<8xf32>
    %5 = vector.multi_reduction <add>, %2, %cst_6 [1] : vector<8x256xf32> to vector<8xf32>
    %6 = vector.shape_cast %5 : vector<8xf32> to vector<8x1xf32>
    %cst_7 = arith.constant 3.906250e-03 : f32
    %7 = vector.broadcast %cst_7 : f32 to vector<8x1xf32>
    %8 = arith.mulf %6, %7 : vector<8x1xf32>
    %9 = vector.broadcast %8 : vector<8x1xf32> to vector<8x256xf32>
    %10 = arith.subf %2, %9 : vector<8x256xf32>
    %11 = arith.mulf %10, %10 : vector<8x256xf32>
    %cst_8 = arith.constant dense<0.000000e+00> : vector<8xf32>
    %12 = vector.multi_reduction <add>, %11, %cst_8 [1] : vector<8x256xf32> to vector<8xf32>
    %13 = vector.shape_cast %12 : vector<8xf32> to vector<8x1xf32>
    %cst_9 = arith.constant 3.906250e-03 : f32
    %14 = vector.broadcast %cst_9 : f32 to vector<8x1xf32>
    %15 = arith.mulf %13, %14 : vector<8x1xf32>
    %cst_10 = arith.constant 9.99999974E-6 : f32
    %16 = vector.broadcast %cst_10 : f32 to vector<8x1xf32>
    %17 = arith.addf %15, %16 : vector<8x1xf32>
    %18 = math.rsqrt %17 : vector<8x1xf32>
    %19 = vector.broadcast %18 : vector<8x1xf32> to vector<8x256xf32>
    %20 = arith.mulf %10, %19 : vector<8x256xf32>
    %21 = vector.broadcast %3 : vector<1x256xf32> to vector<8x256xf32>
    %22 = arith.mulf %20, %21 : vector<8x256xf32>
    %23 = vector.broadcast %4 : vector<1x256xf32> to vector<8x256xf32>
    %24 = arith.addf %22, %23 : vector<8x256xf32>
    %cst_11 = arith.constant 0.000000e+00 : f32
    %25 = vector.broadcast %cst_11 : f32 to vector<8x256xf32>
    %26 = arith.maximumf %24, %25 : vector<8x256xf32>
    %27 = arith.truncf %26 : vector<8x256xf32> to vector<8x256xbf16>
    %c0_12 = arith.constant 0 : index
    %c0_13 = arith.constant 0 : index
    %28 = vector.load %arg3[%c0_12, %c0_13] : memref<256x128xbf16, #tpu.memory_space<vmem>>, vector<256x128xbf16>
    %cst_14 = arith.constant dense<0.000000e+00> : vector<8x128xf32>
    %29 = tpu.matmul %27, %28, %cst_14 {dimension_numbers = #tpu.dot_dimension_numbers<[1], [0], [0], [1], [0, 0, 1, 1], [], []>} : vector<8x256xbf16>, vector<256x128xbf16>, vector<8x128xf32> -> vector<8x128xf32>
    %c2 = arith.constant 2 : index
    %c0_15 = arith.constant 0 : index
    %30 = vector.load %arg5[%c2, %c0_15] : memref<8x256xf32, #tpu.memory_space<vmem>>, vector<1x128xf32>
    %31 = vector.broadcast %30 : vector<1x128xf32> to vector<8x128xf32>
    %32 = arith.addf %29, %31 : vector<8x128xf32>
    %c3 = arith.constant 3 : index
    %c0_16 = arith.constant 0 : index
    %33 = vector.load %arg5[%c3, %c0_16] : memref<8x256xf32, #tpu.memory_space<vmem>>, vector<1x128xf32>
    %c4 = arith.constant 4 : index
    %c0_17 = arith.constant 0 : index
    %34 = vector.load %arg5[%c4, %c0_17] : memref<8x256xf32, #tpu.memory_space<vmem>>, vector<1x128xf32>
    %cst_18 = arith.constant dense<0.000000e+00> : vector<8xf32>
    %35 = vector.multi_reduction <add>, %32, %cst_18 [1] : vector<8x128xf32> to vector<8xf32>
    %36 = vector.shape_cast %35 : vector<8xf32> to vector<8x1xf32>
    %cst_19 = arith.constant 7.812500e-03 : f32
    %37 = vector.broadcast %cst_19 : f32 to vector<8x1xf32>
    %38 = arith.mulf %36, %37 : vector<8x1xf32>
    %39 = vector.broadcast %38 : vector<8x1xf32> to vector<8x128xf32>
    %40 = arith.subf %32, %39 : vector<8x128xf32>
    %41 = arith.mulf %40, %40 : vector<8x128xf32>
    %cst_20 = arith.constant dense<0.000000e+00> : vector<8xf32>
    %42 = vector.multi_reduction <add>, %41, %cst_20 [1] : vector<8x128xf32> to vector<8xf32>
    %43 = vector.shape_cast %42 : vector<8xf32> to vector<8x1xf32>
    %cst_21 = arith.constant 7.812500e-03 : f32
    %44 = vector.broadcast %cst_21 : f32 to vector<8x1xf32>
    %45 = arith.mulf %43, %44 : vector<8x1xf32>
    %cst_22 = arith.constant 9.99999974E-6 : f32
    %46 = vector.broadcast %cst_22 : f32 to vector<8x1xf32>
    %47 = arith.addf %45, %46 : vector<8x1xf32>
    %48 = math.rsqrt %47 : vector<8x1xf32>
    %49 = vector.broadcast %48 : vector<8x1xf32> to vector<8x128xf32>
    %50 = arith.mulf %40, %49 : vector<8x128xf32>
    %51 = vector.broadcast %33 : vector<1x128xf32> to vector<8x128xf32>
    %52 = arith.mulf %50, %51 : vector<8x128xf32>
    %53 = vector.broadcast %34 : vector<1x128xf32> to vector<8x128xf32>
    %54 = arith.addf %52, %53 : vector<8x128xf32>
    %cst_23 = arith.constant 0.000000e+00 : f32
    %55 = vector.broadcast %cst_23 : f32 to vector<8x128xf32>
    %56 = arith.maximumf %54, %55 : vector<8x128xf32>
    %57 = arith.truncf %56 : vector<8x128xf32> to vector<8x128xbf16>
    %c0_24 = arith.constant 0 : index
    %c0_25 = arith.constant 0 : index
    %58 = vector.load %arg4[%c0_24, %c0_25] : memref<128x128xbf16, #tpu.memory_space<vmem>>, vector<128x128xbf16>
    %cst_26 = arith.constant dense<0.000000e+00> : vector<8x128xf32>
    %59 = tpu.matmul %57, %58, %cst_26 {dimension_numbers = #tpu.dot_dimension_numbers<[1], [0], [0], [1], [0, 0, 1, 1], [], []>} : vector<8x128xbf16>, vector<128x128xbf16>, vector<8x128xf32> -> vector<8x128xf32>
    %c5 = arith.constant 5 : index
    %c0_27 = arith.constant 0 : index
    %60 = vector.load %arg5[%c5, %c0_27] : memref<8x256xf32, #tpu.memory_space<vmem>>, vector<1x128xf32>
    %61 = vector.broadcast %60 : vector<1x128xf32> to vector<8x128xf32>
    %62 = arith.addf %59, %61 : vector<8x128xf32>
    %63 = arith.mulf %62, %62 : vector<8x128xf32>
    %cst_28 = arith.constant dense<0.000000e+00> : vector<8xf32>
    %64 = vector.multi_reduction <add>, %63, %cst_28 [1] : vector<8x128xf32> to vector<8xf32>
    %65 = vector.shape_cast %64 : vector<8xf32> to vector<8x1xf32>
    %66 = math.sqrt %65 : vector<8x1xf32>
    %cst_29 = arith.constant 9.99999996E-13 : f32
    %67 = vector.broadcast %cst_29 : f32 to vector<8x1xf32>
    %68 = arith.maximumf %66, %67 : vector<8x1xf32>
    %69 = vector.broadcast %68 : vector<8x1xf32> to vector<8x128xf32>
    %70 = arith.divf %62, %69 : vector<8x128xf32>
    %71 = arith.truncf %70 : vector<8x128xf32> to vector<8x128xbf16>
    %c0_30 = arith.constant 0 : index
    %c0_31 = arith.constant 0 : index
    %72 = vector.load %arg6[%c0_30, %c0_31] : memref<8x128xbf16, #tpu.memory_space<vmem>>, vector<8x128xbf16>
    tpu.vector_store %arg6[%c0_30, %c0_31], %71 {strides = array<i32>} : memref<8x128xbf16, #tpu.memory_space<vmem>>, vector<8x128xbf16>,
    return
  }
  func.func @transform_0(%arg0: i32) -> (i32, i32) {
    %c0_i32 = arith.constant 0 : i32
    %c0_i32_0 = arith.constant 0 : i32
    return %arg0, %c0_i32 : i32, i32
  }
  func.func @transform_1(%arg0: i32) -> (i32, i32) {
    %c0_i32 = arith.constant 0 : i32
    %c0_i32_0 = arith.constant 0 : i32
    %c0_i32_1 = arith.constant 0 : i32
    return %c0_i32, %c0_i32_0 : i32, i32
  }
  func.func @transform_2(%arg0: i32) -> (i32, i32) {
    %c0_i32 = arith.constant 0 : i32
    %c0_i32_0 = arith.constant 0 : i32
    %c0_i32_1 = arith.constant 0 : i32
    return %c0_i32, %c0_i32_0 : i32, i32
  }
  func.func @transform_3(%arg0: i32) -> (i32, i32) {
    %c0_i32 = arith.constant 0 : i32
    %c0_i32_0 = arith.constant 0 : i32
    %c0_i32_1 = arith.constant 0 : i32
    return %c0_i32, %c0_i32_0 : i32, i32
  }
  func.func @transform_4(%arg0: i32) -> (i32, i32) {
    %c0_i32 = arith.constant 0 : i32
    %c0_i32_0 = arith.constant 0 : i32
    %c0_i32_1 = arith.constant 0 : i32
    return %c0_i32, %c0_i32_0 : i32, i32
  }
  func.func @transform_5(%arg0: i32) -> (i32, i32) {
    %c0_i32 = arith.constant 0 : i32
    %c0_i32_0 = arith.constant 0 : i32
    return %arg0, %c0_i32 : i32, i32
  }
}

</mosaic_0001>

<bundles_post_ra>
// kernel: successor_encoder_forward.1
= control target key start
LH: loop header
LB: loop body
LE: loop exit
PB: predicated region body
PF: predicated region fallthrough
CT: control target
= control target key end

     0   :  { %10 = vsyncpa [#allocation3], 0  ;;  %s864_s0 = inlined_call_operand.vmem [shape: bf16[8,128], index: 0, kind: input, shape index: {}]   ;;  %s865_s1 = inlined_call_operand.hbm [shape: bf16[128,256], index: 1, kind: input, shape index: {}]   ;;  %s866_s2 = inlined_call_operand.hbm [shape: bf16[256,128], index: 2, kind: input, shape index: {}]   ;;  %s867_s3 = inlined_call_operand.vmem [shape: bf16[128,128], index: 3, kind: input, shape index: {}]   ;;  %s868_s4 = inlined_call_operand.vmem [shape: f32[8,256], index: 4, kind: input, shape index: {}]   ;;  %s869_s5 = inlined_call_operand.vmem [shape: bf16[8,128], index: 5, kind: output, shape index: {}]  }
   0x1   :  { %11 = vsyncpa [#allocation5], 0  ;;  %s753_s18 = smov [#allocation2]   ;;  %s705_s22 = scalar_lea.hbm %s865_s1, 2048 }
   0x2   :  { %s19_s19 = sshll.u32 %s753_s18, 4  ;;  %p706_p0 = scmp.ne.s32.totalorder %s865_s1, %s705_s22  ;;  %s20_s19 = int_to_ptr.vmem [resolvable:$true] %s19_s19 }
   0x3   :  { %p709_p1 = scmp.lt.u32.totalorder %s705_s22, %s865_s1 }
   0x5   :  { %p711_p2 = pnand %p709_p1, %p706_p0 }
   0x7   :  { %714 = shalt.err (!%p711_p2)
}
   0x8   :  { %s715_s27 = scalar_lea.vmem %s20_s19, 2048  ;;  %p720_p4 = scmp.lt.s32.totalorder %s20_s19, %s20_s19 }
   0x9   :  { %p716_p3 = scmp.ne.s32.totalorder %s20_s19, %s715_s27  ;;  %p721_p5 = scmp.lt.s32.totalorder %s715_s27, %s715_s27 }
   0xb   :  { %p722_p6 = por %p721_p5, %p720_p4 }
   0xd   :  { %p723_p7 = pnand %p722_p6, %p716_p3 }
   0xf   :  { %726 = shalt.err (!%p723_p7)
}
  0x10   :  { %s754_s28 = smov 128   ;;  %s755_s29 = smov 8  }
  0x11   :  { %25 = dma.hbm_to_vmem [thread:$0]  %s865_s1, 2048, %s20_s19, [#allocation3], %s754_s28, %s754_s28, %s755_s29  }
  0x12   :  { %s756_s7 = smov [#allocation4]   ;;  %s727_s11 = scalar_lea.hbm %s866_s2, 2048 }
  0x13   :  { %s31_s8 = sshll.u32 %s756_s7, 4  ;;  %p728_p8 = scmp.ne.s32.totalorder %s866_s2, %s727_s11  ;;  %s32_s8 = int_to_ptr.vmem [resolvable:$true] %s31_s8 }
  0x14   :  { %p731_p9 = scmp.lt.u32.totalorder %s727_s11, %s866_s2 }
  0x16   :  { %p733_p10 = pnand %p731_p9, %p728_p8 }
  0x18   :  { %736 = shalt.err (!%p733_p10)
}
  0x19   :  { %s737_s16 = scalar_lea.vmem %s32_s8, 2048  ;;  %p742_p12 = scmp.lt.s32.totalorder %s32_s8, %s32_s8 }
  0x1a   :  { %p738_p11 = scmp.ne.s32.totalorder %s32_s8, %s737_s16  ;;  %p743_p13 = scmp.lt.s32.totalorder %s737_s16, %s737_s16 }
  0x1c   :  { %p744_p0 = por %p743_p13, %p742_p12 }
  0x1e   :  { %p745_p1 = pnand %p744_p0, %p738_p11 }
  0x20   :  { %748 = shalt.err (!%p745_p1)
}
  0x21   :  { %s757_s1 = smov 64   ;;  %s758_s17 = smov 4  }
  0x22   :  { %37 = dma.hbm_to_vmem [thread:$0]  %s866_s2, 2048, %s32_s8, [#allocation5], %s757_s1, %s757_s1, %s758_s17  }
  0x23   :  { %749 = dma.done.wait [#allocation3], 2048  }
  0x24   :  { %750 = vsyncadd [#allocation3], 4294965248 }
  0x25   :  { %751 = dma.done.wait [#allocation5], 2048  }
  0x26   :  { %752 = vsyncadd [#allocation5], 4294965248  ;;  %v759_v0 = vmov 0   ;;  %v649_v1 = vld [vmem:[#allocation2 + $0x4] ss:$8 sps:$4 sm:$0xff]   ;;  %v677_v34 = vld [vmem:[#allocation4 + $0x50] sm:$0xff]   ;;  %v207_v48 = vlaneseq }
  0x27   :  { %178 = vmatprep.mubr.bf16.mxu0 %v759_v0  ;;  %v651_v2 = vld [vmem:[#allocation2] ss:$8 sps:$4 sm:$0xff]   ;;  %146 = vmatprep.subr.bf16.mxu0 %v649_v1  ;;  %v652_v3 = vld [vmem:[#allocation2 + $0x14] ss:$8 sps:$4 sm:$0xff]   ;;  %v654_v4 = vld [vmem:[#allocation2 + $0x10] ss:$8 sps:$4 sm:$0xff]  }
  0x28   :  { %147 = vmatpush1.bf16.msra.mxu0 %v651_v2  ;;  %v655_v5 = vld [vmem:[#allocation2 + $0x24] ss:$8 sps:$4 sm:$0xff]   ;;  %v657_v6 = vld [vmem:[#allocation2 + $0x20] ss:$8 sps:$4 sm:$0xff]   ;;  %v658_v7 = vld [vmem:[#allocation2 + $0x34] ss:$8 sps:$4 sm:$0xff]  }
  0x29   :  { %148 = vmatprep.subr.bf16.mxu0 %v652_v3  ;;  %v660_v8 = vld [vmem:[#allocation2 + $0x30] ss:$8 sps:$4 sm:$0xff]   ;;  %v661_v9 = vld [vmem:[#allocation2 + $0x44] ss:$8 sps:$4 sm:$0xff]   ;;  %v663_v10 = vld [vmem:[#allocation2 + $0x40] ss:$8 sps:$4 sm:$0xff]  }
  0x2a   :  { %v664_v11 = vld [vmem:[#allocation2 + $0x54] ss:$8 sps:$4 sm:$0xff]   ;;  %v666_v12 = vld [vmem:[#allocation2 + $0x50] ss:$8 sps:$4 sm:$0xff]   ;;  %v667_v13 = vld [vmem:[#allocation2 + $0x64] ss:$8 sps:$4 sm:$0xff]  }
  0x2b   :  { %v669_v14 = vld [vmem:[#allocation2 + $0x60] ss:$8 sps:$4 sm:$0xff]   ;;  %v670_v15 = vld [vmem:[#allocation2 + $0x74] ss:$8 sps:$4 sm:$0xff]   ;;  %v672_v16 = vld [vmem:[#allocation2 + $0x70] ss:$8 sps:$4 sm:$0xff]  }
  0x2c   :  { %149 = vmatpush1.bf16.msra.mxu0 %v654_v4  ;;  %v49_v17 = vld [vmem:[%s864_s0] sm:$0xf]  ;;  %v673_v23 = vld [vmem:[#allocation4 + $0x40] sm:$0xff]   ;;  %v675_v25 = vld [vmem:[#allocation4 + $0x48] sm:$0xff]   ;;  %v208_v50 = vshrl.u32 %v207_v48, 7  ;;  %vm761_vm0 = vmmov 0  }
  0x2d   :  { %150 = vmatprep.subr.bf16.mxu0 %v655_v5  ;;  %v674_v24 = vld [vmem:[#allocation4] sm:$0xff]   ;;  %589 = vmatprep.subr.bf16.mxu1 %v673_v23  ;;  %v676_v26 = vld [vmem:[#allocation4 + $0x8] sm:$0xff]   ;;  %v678_v35 = vld [vmem:[#allocation4 + $0x10] sm:$0xff]  }
  0x2e   :  { %590 = vmatpush3.bf16.msra.mxu1 %v674_v24  ;;  %v679_v36 = vld [vmem:[#allocation4 + $0x58] sm:$0xff]   ;;  %v681_v38 = vld [vmem:[#allocation4 + $0x60] sm:$0xff]   ;;  %v683_v40 = vld [vmem:[#allocation4 + $0x68] sm:$0xff]   ;;  %v209_v51 = vsub.s32 0, %v208_v50  ;;  %v213_v52 = vsub.s32 1, %v208_v50 }
  0x2f   :  { %591 = vmatprep.subr.bf16.mxu1 %v675_v25  ;;  %v680_v37 = vld [vmem:[#allocation4 + $0x18] sm:$0xff]   ;;  %v682_v39 = vld [vmem:[#allocation4 + $0x20] sm:$0xff]   ;;  %v684_v41 = vld [vmem:[#allocation4 + $0x28] sm:$0xff]  }
  0x30   :  { %151 = vmatpush1.bf16.msra.mxu0 %v657_v6  ;;  %v685_v42 = vld [vmem:[#allocation4 + $0x70] sm:$0xff]   ;;  %v687_v44 = vld [vmem:[#allocation4 + $0x78] sm:$0xff]   ;;  %v695_v24 = vld [vmem:[%s867_s3 + $0x30] sm:$0xff]  }
  0x31   :  { %152 = vmatprep.subr.bf16.mxu0 %v658_v7  ;;  %v686_v43 = vld [vmem:[#allocation4 + $0x30] sm:$0xff]   ;;  %v688_v45 = vld [vmem:[#allocation4 + $0x38] sm:$0xff]   ;;  %v696_v25 = vld [vmem:[%s867_s3 + $0x38] sm:$0xff]  }
  0x32   :  { %592 = vmatpush3.bf16.msra.mxu1 %v676_v26  ;;  %v187_v53 = vld [vmem:[%s868_s4] ss:$8 sm:$0x3]  ;;  %v564_v54 = vld [vmem:[%s868_s4 + $0x1] ss:$8 sm:$0x3] }
  0x33   :  { %593 = vmatprep.subr.bf16.mxu1 %v677_v34  ;;  %v210_v55 = vrot.slane %v187_v53, %v209_v51  ;;  %v214_v56 = vrot.slane %v187_v53, %v213_v52  ;;  %v223_v59 = vrot.slane %v564_v54, %v209_v51  ;;  %v227_v60 = vrot.slane %v564_v54, %v213_v52  ;;  %v694_v23 = vld [vmem:[%s867_s3 + $0x28] sm:$0xff]  }
  0x34   :  { %153 = vmatpush1.bf16.msra.mxu0 %v660_v8  ;;  %v268_v8 = vld [vmem:[%s868_s4 + $0x2] ss:$0 sm:$0xff] }
  0x35   :  { %154 = vmatprep.subr.bf16.mxu0 %v661_v9 }
  0x36   :  { %594 = vmatpush3.bf16.msra.mxu1 %v678_v35 }
  0x37   :  { %595 = vmatprep.subr.bf16.mxu1 %v679_v36 }
  0x38   :  { %155 = vmatpush1.bf16.msra.mxu0 %v663_v10 }
  0x39   :  { %156 = vmatprep.subr.bf16.mxu0 %v664_v11 }
  0x3a   :  { %596 = vmatpush3.bf16.msra.mxu1 %v680_v37  ;;  %v438_v37 = vld [vmem:[%s868_s4 + $0x5] ss:$0 sm:$0xff] }
  0x3b   :  { %597 = vmatprep.subr.bf16.mxu1 %v681_v38 }
  0x3c   :  { %157 = vmatpush1.bf16.msra.mxu0 %v666_v12 }
  0x3d   :  { %158 = vmatprep.subr.bf16.mxu0 %v667_v13  ;;  %v689_v13 = vld [vmem:[%s867_s3] sm:$0xff]  }
  0x3e   :  { %598 = vmatpush3.bf16.msra.mxu1 %v682_v39 }
  0x3f   :  { %599 = vmatprep.subr.bf16.mxu1 %v683_v40 }
  0x40   :  { %159 = vmatpush1.bf16.msra.mxu0 %v669_v14  ;;  %v760_v14 = vmov 0.0  }
  0x41   :  { %160 = vmatprep.subr.bf16.mxu0 %v670_v15  ;;  %v690_v15 = vld [vmem:[%s867_s3 + $0x8] sm:$0xff]  }
  0x42   :  { %600 = vmatpush3.bf16.msra.mxu1 %v684_v41 }
  0x43   :  { %601 = vmatprep.subr.bf16.mxu1 %v685_v42 }
  0x44   :  { %161 = vmatpush1.bf16.msra.mxu0 %v672_v16 }
  0x45   :  { %620 = vmatprep.subr.bf16.mxu0 %v760_v14 }
  0x46   :  { %602 = vmatpush3.bf16.msra.mxu1 %v686_v43 }
  0x47   :  { %179 = vmatmul.mubr.bf16.vlgmr.msra.gmra.mrb[0].mxu0 %v49_v17  ;;  %603 = vmatprep.subr.bf16.mxu1 %v687_v44 }
  0x48   :  { %621 = vmatpush3.bf16.msra.mxu0 %v689_v13  ;;  %636 = vmatprep.mubr.msk.bf16.mxu0 %vm761_vm0, %v760_v14 }
  0x49   :  { %622 = vmatprep.subr.bf16.mxu0 %v760_v14 }
  0x4a   :  { %604 = vmatpush3.bf16.msra.mxu1 %v688_v45 }
  0x4c   :  { %623 = vmatpush3.bf16.msra.mxu0 %v690_v15 }
  0x4d   :  { %624 = vmatprep.subr.bf16.mxu0 %v760_v14 }
 0x11a   :  { %v180_v18 = vpop.f32.mrb[0].mxu0 }
 0x11b   :  { %v182_v19 = vpop.f32.mrb[1].mxu0 }
 0x11c   :  { %v184_v20 = vpop.f32.mrb[2].mxu0  ;;  %v190_v21 = vadd.f32 %v182_v19, %v180_v18 }
 0x11d   :  { %v185_v22 = vpop.f32.mrb[3].mxu0  ;;  %v691_v20 = vld [vmem:[%s867_s3 + $0x10] sm:$0xff]  }
 0x11e   :  { %191 = vadd.xlane.f32.xlu0 %v190_v21  ;;  %625 = vmatpush3.bf16.msra.mxu0 %v691_v20  ;;  %v692_v21 = vld [vmem:[%s867_s3 + $0x18] sm:$0xff]   ;;  %v693_v22 = vld [vmem:[%s867_s3 + $0x20] sm:$0xff]  }
 0x11f   :  { %626 = vmatprep.subr.bf16.mxu0 %v760_v14 }
 0x122   :  { %627 = vmatpush3.bf16.msra.mxu0 %v692_v21 }
 0x123   :  { %628 = vmatprep.subr.bf16.mxu0 %v760_v14 }
 0x126   :  { %629 = vmatpush3.bf16.msra.mxu0 %v693_v22 }
 0x127   :  { %630 = vmatprep.subr.bf16.mxu0 %v760_v14 }
 0x12a   :  { %631 = vmatpush3.bf16.msra.mxu0 %v694_v23 }
 0x12b   :  { %632 = vmatprep.subr.bf16.mxu0 %v760_v14 }
 0x12e   :  { %633 = vmatpush3.bf16.msra.mxu0 %v695_v24 }
 0x12f   :  { %634 = vmatprep.subr.bf16.mxu0 %v760_v14 }
 0x132   :  { %635 = vmatpush3.bf16.msra.mxu0 %v696_v25 }
 0x1ab   :  { %v192_v27 = vpop.xlane.xlu0 %191 }
 0x1ac   :  { %v193_v28 = vmul.f32 0.00390625, %v192_v27 }
 0x1ae   :  { %v194_v29 = vsub.f32 %v180_v18, %v193_v28  ;;  %v195_v30 = vsub.f32 %v182_v19, %v193_v28 }
 0x1b0   :  { %v196_v31 = vmul.f32 %v194_v29, %v194_v29  ;;  %v197_v32 = vmul.f32 %v195_v30, %v195_v30 }
 0x1b2   :  { %v198_v33 = vadd.f32 %v197_v32, %v196_v31  ;;  %v406_v32 = vld [vmem:[%s868_s4 + $0x4] ss:$0 sm:$0xff] }
 0x1b4   :  { %199 = vadd.xlane.f32.xlu0 %v198_v33 }
 0x241   :  { %v200_v46 = vpop.xlane.xlu0 %199 }
 0x242   :  { %v201_v47 = vmul.f32 0.00390625, %v200_v46 }
 0x244   :  { %v202_v49 = vadd.f32 1e-05, %v201_v47 }
 0x246   :  { %697 = vrsqrt.f32 %v202_v49 }
 0x250   :  { %v698_v57 = vpop.eup %697 }
 0x251   :  { %v205_v58 = vmul.f32 %v698_v57, %v195_v30  ;;  %v204_v61 = vmul.f32 %v698_v57, %v194_v29  ;;  %v405_v30 = vld [vmem:[%s868_s4 + $0x3] ss:$0 sm:$0xff] }
 0x253   :  { %v218_v62 = vmul.f32 %v214_v56, %v205_v58  ;;  %v217_v63 = vmul.f32 %v210_v55, %v204_v61 }
 0x255   :  { %v231_v0 = vadd.f32 %v227_v60, %v218_v62  ;;  %v230_v1 = vadd.f32 %v223_v59, %v217_v63 }
 0x257   :  { %v233_v2 = vmax.f32 %v231_v0, 0.0  ;;  %v232_v3 = vmax.f32 %v230_v1, 0.0 }
 0x259   :  { %v235_v4 = vpack.c.bf16 %v233_v2, %v233_v2  ;;  %v234_v5 = vpack.c.bf16 %v232_v3, %v232_v3 }
 0x25b   :  { %397 = vmatprep.mubr.bf16.mxu1 %v235_v4 }
 0x25c   :  { %398 = vmatmul.mubr.bf16.vlgmr.msra.gmra.mrb[0].mxu1 %v234_v5 }
 0x32f   :  { %v605_v6 = vpop.f32.mrb[0].mxu1 }
 0x330   :  { %v606_v7 = vpop.f32.mrb[1].mxu1 }
 0x331   :  { %v607_v9 = vadd.f32 %v606_v7, %v605_v6  ;;  %v608_v10 = vpop.f32.mrb[2].mxu1 }
 0x332   :  { %v609_v11 = vpop.f32.mrb[3].mxu1 }
 0x333   :  { %v400_v12 = vadd.f32 %v607_v9, %v268_v8 }
 0x335   :  { %407 = vadd.xlane.f32.xlu1 %v400_v12 }
 0x3c2   :  { %v408_v16 = vpop.xlane.xlu1 %407 }
 0x3c3   :  { %v409_v17 = vmul.f32 0.0078125, %v408_v16 }
 0x3c5   :  { %v410_v18 = vsub.f32 %v400_v12, %v409_v17 }
 0x3c7   :  { %v411_v19 = vmul.f32 %v410_v18, %v410_v18 }
 0x3c9   :  { %412 = vadd.xlane.f32.xlu1 %v411_v19 }
 0x456   :  { %v413_v26 = vpop.xlane.xlu1 %412 }
 0x457   :  { %v414_v27 = vmul.f32 0.0078125, %v413_v26 }
 0x459   :  { %v415_v28 = vadd.f32 1e-05, %v414_v27 }
 0x45b   :  { %699 = vrsqrt.f32 %v415_v28 }
 0x465   :  { %v700_v29 = vpop.eup %699 }
 0x466   :  { %v417_v31 = vmul.f32 %v700_v29, %v410_v18 }
 0x468   :  { %v418_v33 = vmul.f32 %v417_v31, %v405_v30 }
 0x46a   :  { %v419_v34 = vadd.f32 %v418_v33, %v406_v32 }
 0x46c   :  { %v420_v35 = vmax.f32 %v419_v34, 0.0 }
 0x46e   :  { %v421_v36 = vpack.c.bf16 %v420_v35, %v420_v35 }
 0x470   :  { %637 = vmatmul.mubr.bf16.vlgmr.msra.gmra.mrb[4].mxu0 %v421_v36 }
 0x543   :  { %v521_v38 = vpop.f32.mrb[4].mxu0 }
 0x544   :  { %v522_v39 = vadd.f32 %v521_v38, %v438_v37  ;;  %v638_v40 = vpop.f32.mrb[5].mxu0 }
 0x545   :  { %v524_v41 = vpop.f32.mrb[6].mxu0 }
 0x546   :  { %v639_v42 = vpop.f32.mrb[7].mxu0  ;;  %v527_v43 = vmul.f32 %v522_v39, %v522_v39 }
 0x548   :  { %528 = vadd.xlane.f32.xlu0 %v527_v43 }
 0x5d5   :  { %v529_v44 = vpop.xlane.xlu0 %528 }
 0x5d6   :  { %701 = vrsqrt.f32 %v529_v44  ;;  %vm532_vm1 = vcmp.eq.f32.partialorder %v529_v44, inf  ;;  %v535_v47 = vand.u32 2147483648, %v529_v44  ;;  %vm534_vm2 = vcmp.eq.f32.partialorder %v529_v44, 0.0 }
 0x5e0   :  { %v702_v45 = vpop.eup %701 }
 0x5e1   :  { %v531_v46 = vmul.f32 %v702_v45, %v529_v44 }
 0x5e3   :  { %v533_v48 = vsel %vm532_vm1, %v529_v44, %v531_v46 }
 0x5e4   :  { %v536_v49 = vsel %vm534_vm2, %v535_v47, %v533_v48 }
 0x5e5   :  { %v537_v50 = vmax.f32 %v536_v49, 1e-12 }
 0x5e7   :  { %703 = vrcp.f32 %v537_v50 }
 0x5f1   :  { %v704_v51 = vpop.eup %703 }
 0x5f2   :  { %v539_v52 = vmul.f32 %v704_v51, %v522_v39 }
 0x5f4   :  { %v540_v53 = vpack.c.bf16 %v539_v52, %v539_v52 }
 0x5f6   :  { %541 = vst [vmem:[%s869_s5] sm:$0xf] %v540_v53 }
 0x5f7   :  { %546 = vsyncpa [#allocation3], 1 }
 0x5f8   :  { %547 = vsyncpa [#allocation5], 1 }

</bundles_post_ra>
